<compile_context>
chip_gen: v6e
topology: v6e:2x2x1
jax: 0.10.0
libtpu: 0.0.40
codegen_flags: <defaults>
</compile_context>

<pallas_src>
import jax
import jax.numpy as jnp
from jax.experimental import pallas as pl
from jax.experimental.pallas import tpu as pltpu

_LANES = 128


def _round_up(x, m):
    return ((x + m - 1) // m) * m


def _linear_kernel(x_ref, w_ref, b_ref, o_ref):
    # x_ref / o_ref: (tile_rows, 128) lane-dense slab tile in VMEM.
    # w_ref / b_ref: (1, 1) scalars in SMEM.
    w = w_ref[0, 0]
    b = b_ref[0, 0]
    o_ref[...] = x_ref[...] * w + b


def linear_regression_forward(x, weight, bias, *, tile_rows=512, min_pallas_n=8192):
    """Forward pass of LinearRegression: out = x @ weight.T + bias.

    x:      (N, 1) float32
    weight: (1, 1) float32   (torch nn.Linear weight, shape (out, in))
    bias:   (1,)   float32
    """
    n = x.shape[0]
    w_s = weight.reshape(())
    b_s = bias.reshape(())

    # Tiny batch: fixed pallas_call launch + per-step overhead dwarfs 8 FMAs.
    if n < min_pallas_n:
        return x * w_s + b_s

    # Lane-dense slab: (N, 1) -> (rows_padded, 128), rows tiled on a 1-D grid.
    rows = pl.cdiv(n, _LANES)
    tile_r = min(tile_rows, _round_up(rows, 8))      # multiple of 8 sublanes
    rows_p = _round_up(rows, tile_r)                 # grid divides evenly
    total = rows_p * _LANES
    slab = jnp.pad(x.reshape(-1), (0, total - n)).reshape(rows_p, _LANES)

    grid = (rows_p // tile_r,)
    out_slab = pl.pallas_call(
        _linear_kernel,
        out_shape=jax.ShapeDtypeStruct((rows_p, _LANES), x.dtype),
        grid=grid,
        in_specs=[
            # Streaming, double-buffered (tile_r, 128) tiles of the slab.
            pl.BlockSpec((tile_r, _LANES), lambda i: (i, 0)),
            # Scalars live in SMEM: no VMEM tiling / double-buffering for them.
            pl.BlockSpec(memory_space=pltpu.MemorySpace.SMEM),
            pl.BlockSpec(memory_space=pltpu.MemorySpace.SMEM),
        ],
        out_specs=pl.BlockSpec((tile_r, _LANES), lambda i: (i, 0)),
        # Purely HBM-bound: alias the throwaway slab to the output buffer.
        input_output_aliases={0: 0},
        compiler_params=pltpu.CompilerParams(
            dimension_semantics=("parallel",),   # shard batch across TCs (v7x)
        ),
    )(slab, weight.reshape(1, 1), bias.reshape(1, 1))

    # Drop padded elements and restore the (N, 1) PyTorch layout.
    return out_slab.reshape(-1)[:n].reshape(n, 1)


if __name__ == "__main__":
    key = jax.random.PRNGKey(0)
    kx, kw, kb, kx2 = jax.random.split(key, 4)

    # torch nn.Linear(1, 1) parameter shapes: W (1, 1), b (1,)
    weight = jax.random.uniform(kw, (1, 1), dtype=jnp.float32, minval=-1.0, maxval=1.0)
    bias = jax.random.uniform(kb, (1,), dtype=jnp.float32, minval=-1.0, maxval=1.0)

    # Case 1: tiny demo batch (N=8) -> plain-JAX fallback path.
    x_small = jax.random.normal(kx, (8, 1), dtype=jnp.float32)
    out_small = jax.block_until_ready(linear_regression_forward(x_small, weight, bias))
    ref_small = x_small @ weight.T + bias
    assert out_small.shape == (8, 1)
    assert jnp.allclose(out_small, ref_small, atol=1e-6), "small-batch mismatch"

    # Case 2: larger batch (not a multiple of 128) -> Pallas lane-dense kernel,
    # multi-step grid (4 tiles of 512x128) exercising padding + pipelining.
    N = 200_000
    x_big = jax.random.normal(kx2, (N, 1), dtype=jnp.float32)
    out_big = jax.block_until_ready(linear_regression_forward(x_big, weight, bias))
    ref_big = x_big @ weight.T + bias
    assert out_big.shape == (N, 1)
    assert jnp.allclose(out_big, ref_big, atol=1e-6), "large-batch mismatch"

    print("KERNEL_OK")
</pallas_src>

<mosaic_0001>
module attributes {stable_mosaic.version = 11 : i64} {
  func.func @_linear_kernel(%arg0: i32, %arg1: memref<512x128xf32, #tpu.memory_space<vmem>>, %arg2: memref<1x1xf32, #tpu.memory_space<smem>>, %arg3: memref<1x1xf32, #tpu.memory_space<smem>>, %arg4: memref<512x128xf32, #tpu.memory_space<vmem>>) attributes {dimension_semantics = [#tpu.dimension_semantics<parallel>], iteration_bounds = array<i64: 4>, scalar_prefetch = 0 : i64, scratch_operands = 0 : i64, tpu.core_type = #tpu.core_type<tc>, window_params = [{transform_indices = @transform_0, window_bounds = array<i64: 512, 128>}, {transform_indices = @transform_1, window_bounds = array<i64: 1, 1>}, {transform_indices = @transform_2, window_bounds = array<i64: 1, 1>}, {transform_indices = @transform_3, window_bounds = array<i64: 512, 128>}]} {
    %c0 = arith.constant 0 : index
    %c0_0 = arith.constant 0 : index
    %0 = memref.load %arg2[%c0, %c0_0] : memref<1x1xf32, #tpu.memory_space<smem>>
    %c0_1 = arith.constant 0 : index
    %c0_2 = arith.constant 0 : index
    %1 = memref.load %arg3[%c0_1, %c0_2] : memref<1x1xf32, #tpu.memory_space<smem>>
    %c0_3 = arith.constant 0 : index
    %c0_4 = arith.constant 0 : index
    %2 = vector.load %arg1[%c0_3, %c0_4] : memref<512x128xf32, #tpu.memory_space<vmem>>, vector<512x128xf32>
    %3 = vector.broadcast %0 : f32 to vector<512x128xf32>
    %4 = arith.mulf %2, %3 : vector<512x128xf32>
    %5 = vector.broadcast %1 : f32 to vector<512x128xf32>
    %6 = arith.addf %4, %5 : vector<512x128xf32>
    %c0_5 = arith.constant 0 : index
    %c0_6 = arith.constant 0 : index
    %7 = vector.load %arg4[%c0_5, %c0_6] : memref<512x128xf32, #tpu.memory_space<vmem>>, vector<512x128xf32>
    tpu.vector_store %arg4[%c0_5, %c0_6], %6 {strides = array<i32>} : memref<512x128xf32, #tpu.memory_space<vmem>>, vector<512x128xf32>,
    return
  }
  func.func @transform_0(%arg0: i32) -> (i32, i32) {
    %c0_i32 = arith.constant 0 : i32
    %c0_i32_0 = arith.constant 0 : i32
    return %arg0, %c0_i32 : i32, i32
  }
  func.func @transform_1(%arg0: i32) -> (i32, i32) {
    %c0_i32 = arith.constant 0 : i32
    %c0_i32_0 = arith.constant 0 : i32
    %c0_i32_1 = arith.constant 0 : i32
    return %c0_i32, %c0_i32_0 : i32, i32
  }
  func.func @transform_2(%arg0: i32) -> (i32, i32) {
    %c0_i32 = arith.constant 0 : i32
    %c0_i32_0 = arith.constant 0 : i32
    %c0_i32_1 = arith.constant 0 : i32
    return %c0_i32, %c0_i32_0 : i32, i32
  }
  func.func @transform_3(%arg0: i32) -> (i32, i32) {
    %c0_i32 = arith.constant 0 : i32
    %c0_i32_0 = arith.constant 0 : i32
    return %arg0, %c0_i32 : i32, i32
  }
}

</mosaic_0001>

<bundles_post_ra>
// kernel: tpu_custom_call.1
= control target key start
LH: loop header
LB: loop body
LE: loop exit
PB: predicated region body
PF: predicated region fallthrough
CT: control target
= control target key end

     0   :  { %s1153_s0 = inlined_call_operand.hbm [shape: f32[2048,128], index: 0, kind: input, shape index: {}, may-alias: {0,3}]   ;;  %s1154_s1 = inlined_call_operand.<no memory space> [shape: f32[1,1], index: 1, kind: input, shape index: {}]   ;;  %s1155_s2 = inlined_call_operand.<no memory space> [shape: f32[1,1], index: 2, kind: input, shape index: {}]   ;;  %s1156_s3 = inlined_call_operand.hbm [shape: f32[2048,128], index: 3, kind: output, shape index: {}, may-alias: {0,3}]  }
   0x1   :  { %8 = sst [smem:[#allocation2]] %s1154_s1 }
   0x2   :  { %9 = sst [smem:[#allocation3]] %s1155_s2 }
   0x3   :  { %10 = vsyncpa [#allocation5], 0 }
   0x4   :  { %12 = vsyncpa [#allocation5 + $0x1], 0 }
   0x5   :  { %13 = vsyncpa [#allocation6], 0 }
   0x6   :  { %15 = vsyncpa [#allocation6 + $0x1], 0  ;;  %s732_s16 = smov 0   ;;  %s734_s17 = smov 0  }
   0x7   :  { %s736_s18 = smov 0   ;;  %s738_s19 = smov 0  }
   0x8 LB: > { %s753_s1 = sadd.s32 4294967295, %s698_s19   ;;  %s540_s2 = sadd.s32 4294967294, %s698_s19   ;;  %s698_s19 = sphi %s738_s19, %s1170_s19   ;;  %s694_s18 = sphi %s736_s18, %s1169_s18   ;;  %s690_s17 = sphi %s734_s17, %s1168_s17   ;;  %s686_s16 = sphi %s732_s16, %s1167_s16  }
   0x9   : > { %s757_s20 = sadd.s32 1, %s698_s19   ;;  %s28_s21 = sadd.s32 1, %s694_s18 }
   0xa   : > { %s25_s22 = ssub.s32 %s698_s19, %s757_s20  ;;  %p35_p0 = scmp.ne.s32.totalorder %s694_s18, %s690_s17 }
   0xb   : > { %p26_p1 = scmp.eq.s32.totalorder %s25_s22, 0  ;;  %p36_p2 = scmp.eq.s32.totalorder %s698_s19, 0 }
   0xc   : > { %p41_p3 = scmp.ne.s32.totalorder %s690_s17, %s686_s16  ;;  %p42_p4 = scmp.eq.s32.totalorder %s753_s1, 0 }
   0xd   : > { %s769_s23 = scalar_select %p26_p1, %s694_s18, %s28_s21  }
   0xe   : > { %p771_p5 = por %p36_p2, %p35_p0  ;;  %p775_p6 = por %p42_p4, %p41_p3 }
   0xf   : > { %p107_p7 = scmp.eq.s32.totalorder %s753_s1, 3  ;;  %p113_p8 = scmp.eq.s32.totalorder %s540_s2, 3 }
  0x10   : > { %s1160_s25 = scalar_select %p775_p6, 1, 0 }
  0x11   : > { %p568_p9 = scmp.lt.s32.totalorder %s698_s19, 4  ;;  %p781_p10 = por %p107_p7, %p35_p0 }
  0x12   : > { %p785_p11 = por %p113_p8, %p41_p3  ;;  %s139_s28 = sand.u32 1, %s694_s18  }
  0x13   : > { %s1161_s26 = scalar_select %p781_p10, 1, 0 }
  0x14   : > { %s1162_s27 = scalar_select %p785_p11, 1, 0 }
  0x15   : > { %s554_s29 = sshll.u32 %s698_s19, 13  ;;  %s543_s30 = sshll.u32 %s139_s28, 9 }
  0x16   : > { %s794_s6 = scalar_lea.hbm %s1153_s0, %s554_s29  ;;  %s143_s7 = scalar_lea.vmem [#allocation4], %s543_s30 }
  0x17   : > { %s150_s8 = sshll.u32 %s143_s7, 4  ;;  %p798_p12 = pnand %p568_p9, %p771_p5  ;;  %s802_s8 = int_to_ptr.vmem [resolvable:$true] %s150_s8 }
  0x18   : > { %s804_s10 = scalar_lea.sflag [#allocation5], %s139_s28  ;;  %s606_s11 = scalar_lea.hbm %s794_s6, 8192 }
  0x19   : > { %p607_p13 = scmp.ne.s32.totalorder %s794_s6, %s606_s11  ;;  %p608_p0 = pneg %p798_p12 }
  0x1a   : > { %s611_s14 = scalar_lea.hbm %s1153_s0, 32768  ;;  %p612_p3 = scmp.lt.s32.totalorder %s794_s6, %s1153_s0 }
  0x1b   : > { %p609_p1 = pnand %p608_p0, %p607_p13  ;;  %p613_p4 = scmp.lt.s32.totalorder %s611_s14, %s606_s11 }
  0x1d   : > { %p610_p2 = pneg %p609_p1  ;;  %p614_p5 = por %p613_p4, %p612_p3 }
  0x1f   : > { %p615_p7 = pnand %p614_p5, %p610_p2 }
  0x21   : > { %618 = shalt.err (!%p615_p7)
}
  0x22   : > { %s619_s21 = scalar_lea.vmem %s802_s8, 8192  ;;  %s700_s22 = smov [#allocation4]  }
  0x23   : > { %p620_p8 = scmp.ne.s32.totalorder %s802_s8, %s619_s21  ;;  %s624_s24 = sshll.u32 %s700_s22, 4  ;;  %s625_s24 = int_to_ptr.vmem [resolvable:$false] %s624_s24 }
  0x24   : > { %s626_s28 = scalar_lea.vmem %s625_s24, 16384  ;;  %p627_p1 = scmp.lt.s32.totalorder %s802_s8, %s625_s24 }
  0x25   : > { %p622_p9 = pnand %p620_p8, %p608_p0  ;;  %p628_p11 = scmp.lt.s32.totalorder %s626_s28, %s619_s21 }
  0x27   : > { %p623_p13 = pneg %p622_p9  ;;  %p629_p10 = por %p628_p11, %p627_p1 }
  0x29   : > { %p630_p6 = pnand %p629_p10, %p623_p13 }
  0x2b   : > { %633 = shalt.err (!%p630_p6)
}
  0x2c   : > { %s701_s29 = smov 128   ;;  %s702_s30 = smov 8  }
  0x2d   : > { %563 = dma.hbm_to_vmem [thread:$0]  (!%p798_p12), %s794_s6, 8192, %s802_s8, %s804_s10, %s701_s29, %s701_s29, %s702_s30  }
  0x2e   : > { %p546_p0 = scmp.ge.s32.totalorder %s698_s19, 1  ;;  %p158_p2 = scmp.lt.s32.totalorder %s698_s19, 5 }
  0x30   : > { %p159_p3 = pnand %p546_p0, %p158_p2 }
  0x31   : > { %s828_s4 = sand.u32 (!%p159_p3), 1, %s690_s17   ;;  %p1164_p6 = scmp.ne.s32.totalorder (!%p159_p3), %s1160_s25, 0 }
  0x32   : > { %162 = sbr.rel (%p159_p3) target bundleno = 118 (0x76), region = 32  ;;  %s547_s5 = sshll.u32 (!%p159_p3), %s828_s4, 9 }
  0x33   : > { %s165_s7 = scalar_lea.sflag (!%p159_p3), [#allocation5], %s828_s4  ;;  %s834_s11 = scalar_lea.vmem (!%p159_p3), [#allocation4], %s547_s5 }
  0x37   : > { %677 = dma.done.wait (%p1164_p6), %s165_s7, 8192  }
  0x38   : > { %679 = vsyncadd (%p1164_p6), %s165_s7, 4294959104  ;;  %s193_s6 = sld [smem:[#allocation2]]  ;;  %v195_v0 = vld [vmem:[%s834_s11] sm:$0xff]  ;;  %v196_v2 = vld [vmem:[%s834_s11 + $0x8] sm:$0xff]  ;;  %s875_s25 = scalar_lea.vmem [#allocation7], %s547_s5 }
  0x39   : > { %s194_s8 = sld [smem:[#allocation3]]  ;;  %v197_v3 = vld [vmem:[%s834_s11 + $0x10] sm:$0xff]  ;;  %v198_v8 = vld [vmem:[%s834_s11 + $0x18] sm:$0xff]  ;;  %v199_v9 = vld [vmem:[%s834_s11 + $0x20] sm:$0xff]  ;;  %s555_s9 = sshll.u32 %s753_s1, 13 }
  0x3a   : > { %v200_v10 = vld [vmem:[%s834_s11 + $0x28] sm:$0xff]  ;;  %v201_v14 = vld [vmem:[%s834_s11 + $0x30] sm:$0xff]  ;;  %v202_v15 = vld [vmem:[%s834_s11 + $0x38] sm:$0xff]  ;;  %s467_s10 = sshll.u32 %s875_s25, 4  ;;  %s1103_s13 = scalar_lea.hbm %s1156_s3, %s555_s9  ;;  %s1109_s10 = int_to_ptr.vmem [resolvable:$true] %s467_s10 }
  0x3b   : > { %v203_v16 = vld [vmem:[%s834_s11 + $0x40] sm:$0xff]  ;;  %v204_v21 = vld [vmem:[%s834_s11 + $0x48] sm:$0xff]  ;;  %v205_v22 = vld [vmem:[%s834_s11 + $0x50] sm:$0xff]  ;;  %s454_s14 = scalar_lea.sflag [#allocation6], %s828_s4  ;;  %s634_s15 = scalar_lea.vmem %s1109_s10, 8192 }
  0x3c   : > { %v206_v23 = vld [vmem:[%s834_s11 + $0x58] sm:$0xff]  ;;  %v207_v28 = vld [vmem:[%s834_s11 + $0x60] sm:$0xff]  ;;  %v208_v29 = vld [vmem:[%s834_s11 + $0x68] sm:$0xff]  ;;  %p635_p10 = scmp.ne.s32.totalorder %s1109_s10, %s634_s15  ;;  %p1165_p11 = scmp.ne.s32.totalorder %s1161_s26, 0 }
  0x3d   : > { %v209_v30 = vld [vmem:[%s834_s11 + $0x70] sm:$0xff]  ;;  %v210_v35 = vld [vmem:[%s834_s11 + $0x78] sm:$0xff]  ;;  %v211_v40 = vld [vmem:[%s834_s11 + $0x80] sm:$0xff]  ;;  %s703_s2 = smov [#allocation7]  }
  0x3e   : > { %v841_v1 = vstv %s193_s6  ;;  %v212_v41 = vld [vmem:[%s834_s11 + $0x88] sm:$0xff]  ;;  %v213_v42 = vld [vmem:[%s834_s11 + $0x90] sm:$0xff]  ;;  %v214_v47 = vld [vmem:[%s834_s11 + $0x98] sm:$0xff]  ;;  %p636_p12 = pnand %p635_p10, %p1165_p11  ;;  %s638_s21 = sshll.u32 %s703_s2, 4  ;;  %s639_s21 = int_to_ptr.vmem [resolvable:$false] %s638_s21 }
  0x3f   : > { %v260_v4 = vmul.f32 %v841_v1, %v195_v0  ;;  %v846_v5 = vstv %s194_s8  ;;  %v261_v6 = vmul.f32 %v841_v1, %v196_v2  ;;  %v262_v7 = vmul.f32 %v841_v1, %v197_v3  ;;  %v215_v48 = vld [vmem:[%s834_s11 + $0xa0] sm:$0xff]  ;;  %v216_v49 = vld [vmem:[%s834_s11 + $0xa8] sm:$0xff]  ;;  %v217_v54 = vld [vmem:[%s834_s11 + $0xb0] sm:$0xff]  ;;  %s640_s22 = scalar_lea.vmem %s639_s21, 16384  ;;  %p641_p5 = scmp.lt.s32.totalorder %s1109_s10, %s639_s21 }
  0x40   : > { %v263_v11 = vmul.f32 %v841_v1, %v198_v8  ;;  %v264_v12 = vmul.f32 %v841_v1, %v199_v9  ;;  %v265_v13 = vmul.f32 %v841_v1, %v200_v10  ;;  %v266_v20 = vmul.f32 %v841_v1, %v201_v14  ;;  %v218_v59 = vld [vmem:[%s834_s11 + $0xb8] sm:$0xff]  ;;  %v219_v0 = vld [vmem:[%s834_s11 + $0xc0] sm:$0xff]  ;;  %v220_v2 = vld [vmem:[%s834_s11 + $0xc8] sm:$0xff]  ;;  %p637_p4 = pneg %p636_p12  ;;  %p642_p7 = scmp.lt.s32.totalorder %s640_s22, %s634_s15 }
  0x41   : > { %v325_v17 = vadd.f32 %v846_v5, %v260_v4  ;;  %v326_v18 = vadd.f32 %v846_v5, %v261_v6  ;;  %v327_v19 = vadd.f32 %v846_v5, %v262_v7  ;;  %v267_v27 = vmul.f32 %v841_v1, %v202_v15  ;;  %v221_v3 = vld [vmem:[%s834_s11 + $0xd0] sm:$0xff]  ;;  %v222_v9 = vld [vmem:[%s834_s11 + $0xd8] sm:$0xff]  ;;  %v223_v10 = vld [vmem:[%s834_s11 + $0xe0] sm:$0xff] }
  0x42   : > { %v328_v24 = vadd.f32 %v846_v5, %v263_v11  ;;  %v329_v25 = vadd.f32 %v846_v5, %v264_v12  ;;  %v330_v26 = vadd.f32 %v846_v5, %v265_v13  ;;  %v331_v31 = vadd.f32 %v846_v5, %v266_v20  ;;  %v224_v11 = vld [vmem:[%s834_s11 + $0xe8] sm:$0xff]  ;;  %p643_p8 = por %p642_p7, %p641_p5 }
  0x43   : > { %389 = vst [vmem:[%s875_s25] sm:$0xff] %v325_v17  ;;  %390 = vst [vmem:[%s875_s25 + $0x8] sm:$0xff] %v326_v18  ;;  %v268_v32 = vmul.f32 %v841_v1, %v203_v16  ;;  %v269_v33 = vmul.f32 %v841_v1, %v204_v21  ;;  %v270_v34 = vmul.f32 %v841_v1, %v205_v22  ;;  %v225_v16 = vld [vmem:[%s834_s11 + $0xf0] sm:$0xff]  ;;  %v226_v21 = vld [vmem:[%s834_s11 + $0xf8] sm:$0xff] }
  0x44   : > { %391 = vst [vmem:[%s875_s25 + $0x10] sm:$0xff] %v327_v19  ;;  %392 = vst [vmem:[%s875_s25 + $0x18] sm:$0xff] %v328_v24  ;;  %v332_v36 = vadd.f32 %v846_v5, %v267_v27  ;;  %v271_v37 = vmul.f32 %v841_v1, %v206_v23  ;;  %v272_v38 = vmul.f32 %v841_v1, %v207_v28  ;;  %v228_v27 = vld [vmem:[%s834_s11 + $0x108] sm:$0xff]  ;;  %v229_v28 = vld [vmem:[%s834_s11 + $0x110] sm:$0xff]  ;;  %p644_p9 = pnand %p643_p8, %p637_p4 }
  0x45   : > { %393 = vst [vmem:[%s875_s25 + $0x20] sm:$0xff] %v329_v25  ;;  %394 = vst [vmem:[%s875_s25 + $0x28] sm:$0xff] %v330_v26  ;;  %v273_v39 = vmul.f32 %v841_v1, %v208_v29  ;;  %v333_v43 = vadd.f32 %v846_v5, %v268_v32  ;;  %v334_v44 = vadd.f32 %v846_v5, %v269_v33  ;;  %v227_v26 = vld [vmem:[%s834_s11 + $0x100] sm:$0xff]  ;;  %v230_v33 = vld [vmem:[%s834_s11 + $0x118] sm:$0xff] }
  0x46   : > { %395 = vst [vmem:[%s875_s25 + $0x30] sm:$0xff] %v331_v31  ;;  %v335_v45 = vadd.f32 %v846_v5, %v270_v34  ;;  %v274_v46 = vmul.f32 %v841_v1, %v209_v30  ;;  %396 = vst [vmem:[%s875_s25 + $0x38] sm:$0xff] %v332_v36  ;;  %v336_v50 = vadd.f32 %v846_v5, %v271_v37  ;;  %v231_v34 = vld [vmem:[%s834_s11 + $0x120] sm:$0xff] }
  0x47   : > { %v337_v51 = vadd.f32 %v846_v5, %v272_v38  ;;  %v338_v52 = vadd.f32 %v846_v5, %v273_v39  ;;  %v275_v53 = vmul.f32 %v841_v1, %v210_v35  ;;  %397 = vst [vmem:[%s875_s25 + $0x40] sm:$0xff] %v333_v43  ;;  %398 = vst [vmem:[%s875_s25 + $0x48] sm:$0xff] %v334_v44  ;;  %v232_v35 = vld [vmem:[%s834_s11 + $0x128] sm:$0xff] }
  0x48   : > { %399 = vst [vmem:[%s875_s25 + $0x50] sm:$0xff] %v335_v45  ;;  %v339_v55 = vadd.f32 %v846_v5, %v274_v46  ;;  %v276_v56 = vmul.f32 %v841_v1, %v211_v40  ;;  %v277_v57 = vmul.f32 %v841_v1, %v212_v41  ;;  %v278_v58 = vmul.f32 %v841_v1, %v213_v42  ;;  %v233_v40 = vld [vmem:[%s834_s11 + $0x130] sm:$0xff]  ;;  %v234_v45 = vld [vmem:[%s834_s11 + $0x138] sm:$0xff] }
  0x49   : > { %400 = vst [vmem:[%s875_s25 + $0x58] sm:$0xff] %v336_v50  ;;  %401 = vst [vmem:[%s875_s25 + $0x60] sm:$0xff] %v337_v51  ;;  %v340_v60 = vadd.f32 %v846_v5, %v275_v53  ;;  %v279_v61 = vmul.f32 %v841_v1, %v214_v47  ;;  %v280_v62 = vmul.f32 %v841_v1, %v215_v48  ;;  %v235_v50 = vld [vmem:[%s834_s11 + $0x140] sm:$0xff]  ;;  %v236_v51 = vld [vmem:[%s834_s11 + $0x148] sm:$0xff] }
  0x4a   : > { %402 = vst [vmem:[%s875_s25 + $0x68] sm:$0xff] %v338_v52  ;;  %v281_v63 = vmul.f32 %v841_v1, %v216_v49  ;;  %403 = vst [vmem:[%s875_s25 + $0x70] sm:$0xff] %v339_v55  ;;  %v341_v4 = vadd.f32 %v846_v5, %v276_v56  ;;  %v342_v6 = vadd.f32 %v846_v5, %v277_v57  ;;  %v237_v52 = vld [vmem:[%s834_s11 + $0x150] sm:$0xff]  ;;  %v238_v57 = vld [vmem:[%s834_s11 + $0x158] sm:$0xff] }
  0x4b   : > { %v343_v7 = vadd.f32 %v846_v5, %v278_v58  ;;  %v282_v8 = vmul.f32 %v841_v1, %v217_v54  ;;  %404 = vst [vmem:[%s875_s25 + $0x78] sm:$0xff] %v340_v60  ;;  %v344_v12 = vadd.f32 %v846_v5, %v279_v61  ;;  %v345_v13 = vadd.f32 %v846_v5, %v280_v62  ;;  %v239_v58 = vld [vmem:[%s834_s11 + $0x160] sm:$0xff] }
  0x4c   : > { %v346_v14 = vadd.f32 %v846_v5, %v281_v63  ;;  %v283_v15 = vmul.f32 %v841_v1, %v218_v59  ;;  %405 = vst [vmem:[%s875_s25 + $0x80] sm:$0xff] %v341_v4  ;;  %406 = vst [vmem:[%s875_s25 + $0x88] sm:$0xff] %v342_v6  ;;  %v284_v18 = vmul.f32 %v841_v1, %v219_v0  ;;  %v240_v59 = vld [vmem:[%s834_s11 + $0x168] sm:$0xff]  ;;  %v241_v0 = vld [vmem:[%s834_s11 + $0x170] sm:$0xff] }
  0x4d   : > { %407 = vst [vmem:[%s875_s25 + $0x90] sm:$0xff] %v343_v7  ;;  %v347_v17 = vadd.f32 %v846_v5, %v282_v8  ;;  %v285_v19 = vmul.f32 %v841_v1, %v220_v2  ;;  %v286_v20 = vmul.f32 %v841_v1, %v221_v3  ;;  %408 = vst [vmem:[%s875_s25 + $0x98] sm:$0xff] %v344_v12  ;;  %v242_v7 = vld [vmem:[%s834_s11 + $0x178] sm:$0xff]  ;;  %v243_v12 = vld [vmem:[%s834_s11 + $0x180] sm:$0xff] }
  0x4e   : > { %409 = vst [vmem:[%s875_s25 + $0xa0] sm:$0xff] %v345_v13  ;;  %410 = vst [vmem:[%s875_s25 + $0xa8] sm:$0xff] %v346_v14  ;;  %v348_v22 = vadd.f32 %v846_v5, %v283_v15  ;;  %v287_v23 = vmul.f32 %v841_v1, %v222_v9  ;;  %v288_v24 = vmul.f32 %v841_v1, %v223_v10  ;;  %v244_v13 = vld [vmem:[%s834_s11 + $0x188] sm:$0xff]  ;;  %v245_v14 = vld [vmem:[%s834_s11 + $0x190] sm:$0xff] }
  0x4f   : > { %v289_v25 = vmul.f32 %v841_v1, %v224_v11  ;;  %411 = vst [vmem:[%s875_s25 + $0xb0] sm:$0xff] %v347_v17  ;;  %v349_v29 = vadd.f32 %v846_v5, %v284_v18  ;;  %v350_v30 = vadd.f32 %v846_v5, %v285_v19  ;;  %v351_v31 = vadd.f32 %v846_v5, %v286_v20  ;;  %v246_v19 = vld [vmem:[%s834_s11 + $0x198] sm:$0xff]  ;;  %v247_v20 = vld [vmem:[%s834_s11 + $0x1a0] sm:$0xff] }
  0x50   : > { %v290_v32 = vmul.f32 %v841_v1, %v225_v16  ;;  %412 = vst [vmem:[%s875_s25 + $0xb8] sm:$0xff] %v348_v22  ;;  %v352_v36 = vadd.f32 %v846_v5, %v287_v23  ;;  %v353_v37 = vadd.f32 %v846_v5, %v288_v24  ;;  %v291_v39 = vmul.f32 %v841_v1, %v226_v21  ;;  %v248_v21 = vld [vmem:[%s834_s11 + $0x1a8] sm:$0xff] }
  0x51   : > { %v354_v38 = vadd.f32 %v846_v5, %v289_v25  ;;  %413 = vst [vmem:[%s875_s25 + $0xc0] sm:$0xff] %v349_v29  ;;  %414 = vst [vmem:[%s875_s25 + $0xc8] sm:$0xff] %v350_v30  ;;  %v292_v42 = vmul.f32 %v841_v1, %v227_v26  ;;  %v293_v43 = vmul.f32 %v841_v1, %v228_v27  ;;  %v249_v26 = vld [vmem:[%s834_s11 + $0x1b0] sm:$0xff] }
  0x52   : > { %415 = vst [vmem:[%s875_s25 + $0xd0] sm:$0xff] %v351_v31  ;;  %v355_v41 = vadd.f32 %v846_v5, %v290_v32  ;;  %v294_v44 = vmul.f32 %v841_v1, %v229_v28  ;;  %416 = vst [vmem:[%s875_s25 + $0xd8] sm:$0xff] %v352_v36  ;;  %v356_v46 = vadd.f32 %v846_v5, %v291_v39  ;;  %v250_v31 = vld [vmem:[%s834_s11 + $0x1b8] sm:$0xff]  ;;  %v251_v36 = vld [vmem:[%s834_s11 + $0x1c0] sm:$0xff] }
  0x53   : > { %417 = vst [vmem:[%s875_s25 + $0xe0] sm:$0xff] %v353_v37  ;;  %418 = vst [vmem:[%s875_s25 + $0xe8] sm:$0xff] %v354_v38  ;;  %v295_v47 = vmul.f32 %v841_v1, %v230_v33  ;;  %v296_v48 = vmul.f32 %v841_v1, %v231_v34  ;;  %v297_v49 = vmul.f32 %v841_v1, %v232_v35  ;;  %v252_v37 = vld [vmem:[%s834_s11 + $0x1c8] sm:$0xff]  ;;  %v253_v38 = vld [vmem:[%s834_s11 + $0x1d0] sm:$0xff] }
  0x54   : > { %419 = vst [vmem:[%s875_s25 + $0xf0] sm:$0xff] %v355_v41  ;;  %v357_v53 = vadd.f32 %v846_v5, %v292_v42  ;;  %v358_v54 = vadd.f32 %v846_v5, %v293_v43  ;;  %v359_v55 = vadd.f32 %v846_v5, %v294_v44  ;;  %v298_v56 = vmul.f32 %v841_v1, %v233_v40  ;;  %v254_v43 = vld [vmem:[%s834_s11 + $0x1d8] sm:$0xff]  ;;  %v255_v44 = vld [vmem:[%s834_s11 + $0x1e0] sm:$0xff] }
  0x55   : > { %420 = vst [vmem:[%s875_s25 + $0xf8] sm:$0xff] %v356_v46  ;;  %v360_v60 = vadd.f32 %v846_v5, %v295_v47  ;;  %v361_v61 = vadd.f32 %v846_v5, %v296_v48  ;;  %v362_v62 = vadd.f32 %v846_v5, %v297_v49  ;;  %v299_v63 = vmul.f32 %v841_v1, %v234_v45  ;;  %v256_v45 = vld [vmem:[%s834_s11 + $0x1e8] sm:$0xff] }
  0x56   : > { %421 = vst [vmem:[%s875_s25 + $0x100] sm:$0xff] %v357_v53  ;;  %422 = vst [vmem:[%s875_s25 + $0x108] sm:$0xff] %v358_v54  ;;  %v363_v2 = vadd.f32 %v846_v5, %v298_v56  ;;  %v300_v3 = vmul.f32 %v841_v1, %v235_v50  ;;  %v301_v4 = vmul.f32 %v841_v1, %v236_v51  ;;  %v257_v50 = vld [vmem:[%s834_s11 + $0x1f0] sm:$0xff] }
  0x57   : > { %423 = vst [vmem:[%s875_s25 + $0x110] sm:$0xff] %v359_v55  ;;  %v302_v6 = vmul.f32 %v841_v1, %v237_v52  ;;  %424 = vst [vmem:[%s875_s25 + $0x118] sm:$0xff] %v360_v60  ;;  %v364_v8 = vadd.f32 %v846_v5, %v299_v63  ;;  %v303_v9 = vmul.f32 %v841_v1, %v238_v57  ;;  %v258_v55 = vld [vmem:[%s834_s11 + $0x1f8] sm:$0xff] }
  0x58   : > { %425 = vst [vmem:[%s875_s25 + $0x120] sm:$0xff] %v361_v61  ;;  %426 = vst [vmem:[%s875_s25 + $0x128] sm:$0xff] %v362_v62  ;;  %v304_v10 = vmul.f32 %v841_v1, %v239_v58  ;;  %v305_v11 = vmul.f32 %v841_v1, %v240_v59  ;;  %v365_v15 = vadd.f32 %v846_v5, %v300_v3 }
  0x59   : > { %427 = vst [vmem:[%s875_s25 + $0x130] sm:$0xff] %v363_v2  ;;  %v366_v16 = vadd.f32 %v846_v5, %v301_v4  ;;  %v367_v17 = vadd.f32 %v846_v5, %v302_v6  ;;  %v306_v18 = vmul.f32 %v841_v1, %v241_v0  ;;  %428 = vst [vmem:[%s875_s25 + $0x138] sm:$0xff] %v364_v8 }
  0x5a   : > { %v368_v22 = vadd.f32 %v846_v5, %v303_v9  ;;  %v369_v23 = vadd.f32 %v846_v5, %v304_v10  ;;  %v370_v24 = vadd.f32 %v846_v5, %v305_v11  ;;  %v307_v25 = vmul.f32 %v841_v1, %v242_v7  ;;  %429 = vst [vmem:[%s875_s25 + $0x140] sm:$0xff] %v365_v15 }
  0x5b   : > { %430 = vst [vmem:[%s875_s25 + $0x148] sm:$0xff] %v366_v16  ;;  %431 = vst [vmem:[%s875_s25 + $0x150] sm:$0xff] %v367_v17  ;;  %v371_v27 = vadd.f32 %v846_v5, %v306_v18  ;;  %v308_v28 = vmul.f32 %v841_v1, %v243_v12  ;;  %v309_v29 = vmul.f32 %v841_v1, %v244_v13 }
  0x5c   : > { %v310_v30 = vmul.f32 %v841_v1, %v245_v14  ;;  %432 = vst [vmem:[%s875_s25 + $0x158] sm:$0xff] %v368_v22  ;;  %433 = vst [vmem:[%s875_s25 + $0x160] sm:$0xff] %v369_v23  ;;  %v372_v32 = vadd.f32 %v846_v5, %v307_v25  ;;  %v311_v33 = vmul.f32 %v841_v1, %v246_v19 }
  0x5d   : > { %434 = vst [vmem:[%s875_s25 + $0x168] sm:$0xff] %v370_v24  ;;  %v312_v34 = vmul.f32 %v841_v1, %v247_v20  ;;  %v313_v35 = vmul.f32 %v841_v1, %v248_v21  ;;  %435 = vst [vmem:[%s875_s25 + $0x170] sm:$0xff] %v371_v27  ;;  %v373_v39 = vadd.f32 %v846_v5, %v308_v28 }
  0x5e   : > { %v374_v40 = vadd.f32 %v846_v5, %v309_v29  ;;  %v375_v41 = vadd.f32 %v846_v5, %v310_v30  ;;  %v314_v42 = vmul.f32 %v841_v1, %v249_v26  ;;  %436 = vst [vmem:[%s875_s25 + $0x178] sm:$0xff] %v372_v32  ;;  %v376_v46 = vadd.f32 %v846_v5, %v311_v33 }
  0x5f   : > { %v377_v47 = vadd.f32 %v846_v5, %v312_v34  ;;  %v378_v48 = vadd.f32 %v846_v5, %v313_v35  ;;  %v315_v49 = vmul.f32 %v841_v1, %v250_v31  ;;  %437 = vst [vmem:[%s875_s25 + $0x180] sm:$0xff] %v373_v39  ;;  %v316_v52 = vmul.f32 %v841_v1, %v251_v36 }
  0x60   : > { %438 = vst [vmem:[%s875_s25 + $0x188] sm:$0xff] %v374_v40  ;;  %439 = vst [vmem:[%s875_s25 + $0x190] sm:$0xff] %v375_v41  ;;  %v379_v51 = vadd.f32 %v846_v5, %v314_v42  ;;  %v317_v53 = vmul.f32 %v841_v1, %v252_v37  ;;  %v318_v54 = vmul.f32 %v841_v1, %v253_v38 }
  0x61   : > { %440 = vst [vmem:[%s875_s25 + $0x198] sm:$0xff] %v376_v46  ;;  %441 = vst [vmem:[%s875_s25 + $0x1a0] sm:$0xff] %v377_v47  ;;  %v380_v56 = vadd.f32 %v846_v5, %v315_v49  ;;  %v319_v57 = vmul.f32 %v841_v1, %v254_v43  ;;  %v320_v58 = vmul.f32 %v841_v1, %v255_v44 }
  0x62   : > { %442 = vst [vmem:[%s875_s25 + $0x1a8] sm:$0xff] %v378_v48  ;;  %v321_v59 = vmul.f32 %v841_v1, %v256_v45  ;;  %443 = vst [vmem:[%s875_s25 + $0x1b0] sm:$0xff] %v379_v51  ;;  %v381_v60 = vadd.f32 %v846_v5, %v316_v52  ;;  %v382_v61 = vadd.f32 %v846_v5, %v317_v53 }
  0x63   : > { %v383_v62 = vadd.f32 %v846_v5, %v318_v54  ;;  %v322_v63 = vmul.f32 %v841_v1, %v257_v50  ;;  %444 = vst [vmem:[%s875_s25 + $0x1b8] sm:$0xff] %v380_v56  ;;  %v384_v0 = vadd.f32 %v846_v5, %v319_v57  ;;  %v385_v2 = vadd.f32 %v846_v5, %v320_v58 }
  0x64   : > { %v386_v3 = vadd.f32 %v846_v5, %v321_v59  ;;  %v323_v4 = vmul.f32 %v841_v1, %v258_v55  ;;  %445 = vst [vmem:[%s875_s25 + $0x1c0] sm:$0xff] %v381_v60  ;;  %446 = vst [vmem:[%s875_s25 + $0x1c8] sm:$0xff] %v382_v61 }
  0x65   : > { %447 = vst [vmem:[%s875_s25 + $0x1d0] sm:$0xff] %v383_v62  ;;  %v387_v6 = vadd.f32 %v846_v5, %v322_v63  ;;  %448 = vst [vmem:[%s875_s25 + $0x1d8] sm:$0xff] %v384_v0 }
  0x66   : > { %449 = vst [vmem:[%s875_s25 + $0x1e0] sm:$0xff] %v385_v2  ;;  %450 = vst [vmem:[%s875_s25 + $0x1e8] sm:$0xff] %v386_v3  ;;  %v388_v7 = vadd.f32 %v846_v5, %v323_v4 }
  0x67   : > { %451 = vst [vmem:[%s875_s25 + $0x1f0] sm:$0xff] %v387_v6 }
  0x68   : > { %452 = vst [vmem:[%s875_s25 + $0x1f8] sm:$0xff] %v388_v7 }
  0x69   : > { %647 = shalt.err (!%p644_p9)
}
  0x6a   : > { %s648_s24 = scalar_lea.hbm %s1103_s13, 8192  ;;  %s652_s30 = scalar_lea.hbm %s1156_s3, 32768 }
  0x6b   : > { %p649_p13 = scmp.ne.s32.totalorder %s1103_s13, %s648_s24  ;;  %p653_p2 = scmp.lt.s32.totalorder %s1103_s13, %s1156_s3 }
  0x6c   : > { %p654_p3 = scmp.lt.s32.totalorder %s652_s30, %s648_s24 }
  0x6d   : > { %p650_p1 = pnand %p649_p13, %p1165_p11 }
  0x6e   : > { %p655_p6 = por %p654_p3, %p653_p2 }
  0x6f   : > { %p651_p0 = pneg %p650_p1 }
  0x71   : > { %p656_p10 = pnand %p655_p6, %p651_p0 }
  0x73   : > { %659 = shalt.err (!%p656_p10)
}
  0x74   : > { %s704_s11 = smov 128   ;;  %s705_s6 = smov 8  }
  0x75   : > { %558 = dma.vmem_to_hbm [thread:$0]  (%p1165_p11), %s1109_s10, 8192, %s1103_s13, %s454_s14, %s704_s11, %s704_s11, %s705_s6  }
  0x76 PF: > { %p569_p12 = scmp.ge.s32.totalorder %s698_s19, 2  ;;  %s482_s8 = sand.u32 1, %s686_s16  }
  0x77   : > { %p1166_p4 = scmp.ne.s32.totalorder %s1162_s27, 0  ;;  %s483_s25 = scalar_lea.sflag [#allocation6], %s482_s8 }
  0x79   : > { %p565_p5 = pnand %p569_p12, %p1166_p4 }
  0x7b   : > { %p566_p7 = pneg %p565_p5 }
  0x7d   : > { %681 = dma.done.wait (%p566_p7), %s483_s25, 8192  }
  0x7e   : > { %683 = vsyncadd (%p566_p7), %s483_s25, 4294959104  ;;  %p18_p8 = scmp.ge.s32.totalorder %s757_s20, 6   ;;  %s1167_s16 = smov %s690_s17 }
  0x7f   : > { %s1168_s17 = smov %s694_s18  ;;  %s1169_s18 = smov %s769_s23 }
  0x80   : > { %s1170_s19 = smov %s757_s20  ;;  %20 = sbr.rel (!%p18_p8) target bundleno = 8 (0x8), region = 77 }
  0x85   :  { %488 = vsyncpa [#allocation5], 1 }
  0x86   :  { %490 = vsyncpa [#allocation5 + $0x1], 1 }
  0x87   :  { %491 = vsyncpa [#allocation6], 1 }
  0x88   :  { %493 = vsyncpa [#allocation6 + $0x1], 1 }

</bundles_post_ra>
